<compile_context>
chip_gen: v6e
topology: v6e:2x2x1
jax: 0.10.0
libtpu: 0.0.40
codegen_flags: <defaults>
</compile_context>

<pallas_src>
import jax
import jax.numpy as jnp
from jax import lax
from jax.experimental import pallas as pl
from jax.experimental.pallas import tpu as pltpu


_LANE = 128
# Packed-sublane row alignment by element size: f32 -> 8, bf16/fp16 -> 16, int8/fp8 -> 32.
_SUBLANE = {4: 8, 2: 16, 1: 32}

# Conservative in-VMEM working-set budget; fits every generation.  When the
# working set exceeds the small scoped default we raise the limit to a value
# that is safe on all of v5e (128 MiB phys), v6e (128 MiB), v7x (64 MiB).
_VMEM_BUDGET = 24 * 1024 * 1024
_VMEM_LIMIT = 40 * 1024 * 1024


def _round_up(n: int, m: int) -> int:
    return ((n + m - 1) // m) * m


def _cdiv(a: int, b: int) -> int:
    return (a + b - 1) // b


def _pick_tile(total: int, cap: int) -> int:
    """Largest multiple of 128 that divides `total` (itself a multiple of 128) and is <= cap."""
    best = _LANE
    t = _LANE
    while t <= min(total, cap):
        if total % t == 0:
            best = t
        t += _LANE
    return best


# ----------------------------------------------------------------------------
# Kernels
# ----------------------------------------------------------------------------
def _single_pass_kernel(x_ref, w_ref, b_ref, o_ref):
    """Whole-C reduction in one MXU pass.

    x_ref: (tm, Cp) activation tile        (streams over the batch grid)
    w_ref: (Cp, Op) weight, grid-constant  (DMA'd from HBM exactly once)
    b_ref: (1,  Op) f32 bias, grid-constant
    o_ref: (tm, Op) output tile

    No accumulator scratch, no zero-init, no read-modify-write stores.
    """
    o_ref[...] = (
        jnp.dot(x_ref[...], w_ref[...], preferred_element_type=jnp.float32)
        + b_ref[...]
    ).astype(o_ref.dtype)


def _tiled_kernel(x_ref, w_ref, b_ref, o_ref, acc_ref):
    """Fallback tiled-reduction path for very large O*C.

    x_ref:   (tm, tk)   w_ref: (tk, tn)   b_ref: (1, tn)
    o_ref:   (tm, tn)   acc_ref: (tm, tn) f32 scratch (persists across k)
    """
    k = pl.program_id(2)
    partial = jnp.dot(x_ref[...], w_ref[...], preferred_element_type=jnp.float32)

    @pl.when(k == 0)
    def _():
        # Direct assign: no tm x tn zeros materialization and no extra
        # accumulator read -- relieves the vector-store slot (1 on v5e).
        acc_ref[...] = partial

    @pl.when(k > 0)
    def _():
        acc_ref[...] += partial

    @pl.when(k == pl.num_programs(2) - 1)
    def _():
        o_ref[...] = (acc_ref[...] + b_ref[...]).astype(o_ref.dtype)


# ----------------------------------------------------------------------------
# Wrappers
# ----------------------------------------------------------------------------
def prepare_conv1d_head_params(weight, bias, *, compute_dtype=None):
    """One-time parameter preprocessing (hoist out of the per-call path).

    Args:
      weight: (O, C, 1) PyTorch Conv1d weight.
      bias:   (O,) Conv1d bias.
      compute_dtype: dtype the kernel contracts in (defaults to weight dtype).

    Returns:
      (w_co, b_row, out_features): weight as a lane-padded (Cp, Op) matrix in
      the canonical contraction layout (so the kernel needs no transpose),
      bias as a padded f32 (1, Op) row, and the logical O.
    """
    O, C, K = weight.shape
    assert K == 1, "Conv1dHead with length-1 input requires kernel_size=1"
    compute_dtype = compute_dtype or weight.dtype
    Cp = _round_up(C, _LANE)
    Op = _round_up(O, _LANE)
    w_co = jnp.transpose(weight[:, :, 0]).astype(compute_dtype)          # (C, O)
    w_co = jnp.pad(w_co, ((0, Cp - C), (0, Op - O)))                     # zero pad: exact
    b_row = jnp.pad(bias.astype(jnp.float32), (0, Op - O)).reshape(1, Op)
    return w_co, b_row, O


def conv1d_head_apply(x, w_co, b_row, out_features, *, tm=None, tn=None, tk=None):
    """Forward pass of Conv1dHead given prepared parameters.

    x:     (B, C) input features.
    w_co:  (Cp, Op) prepared weight (from prepare_conv1d_head_params).
    b_row: (1, Op) prepared f32 bias.
    Returns (B, out_features) in x.dtype.
    """
    B, C = x.shape
    Cp, Op = w_co.shape
    assert Cp % _LANE == 0 and Op % _LANE == 0
    assert Cp >= C and Op >= out_features

    dtype = x.dtype
    isz = jnp.dtype(dtype).itemsize
    sublane = _SUBLANE.get(isz, 8)

    # ---- batch tile --------------------------------------------------------
    if tm is None:
        tm = min(_round_up(B, sublane), 512)
        # Give v7x's second TensorCore a parallel tile whenever B allows it.
        if B >= 2 * sublane and _round_up(B, tm) // tm < 2:
            tm = _round_up(_cdiv(B, 2), sublane)
    Bp = _round_up(B, tm)

    # ---- pad x only when needed (no per-call copy when C is lane-aligned
    # ---- and B divides the batch tile) -------------------------------------
    if Bp != B or Cp != C:
        x = jnp.pad(x, ((0, Bp - B), (0, Cp - C)))   # zeros are exact for the reduction

    flops = 2 * B * C * out_features

    # ---- path selection ----------------------------------------------------
    # Single-pass path: full-C reduction, weight resident in VMEM.
    # Budget counts 2 buffers for every operand even though the grid-constant
    # weight/bias are DMA'd only once.
    single_ws = (2 * Cp * Op + 2 * tm * Cp + 2 * tm * Op) * isz + 2 * Op * 4
    use_single = (tn is None and tk is None and single_ws <= _VMEM_BUDGET)

    if use_single:
        grid = (Bp // tm,)
        ws = single_ws
        cost = pl.CostEstimate(
            flops=flops, transcendentals=0,
            bytes_accessed=(Bp * Cp + Cp * Op + Bp * Op) * isz + Op * 4)
        out = pl.pallas_call(
            _single_pass_kernel,
            out_shape=jax.ShapeDtypeStruct((Bp, Op), dtype),
            grid_spec=pltpu.PrefetchScalarGridSpec(
                num_scalar_prefetch=0,
                grid=grid,
                in_specs=[
                    pl.BlockSpec((tm, Cp), lambda i: (i, 0)),   # x: streams over batch
                    pl.BlockSpec((Cp, Op), lambda i: (0, 0)),   # weight: grid-constant
                    pl.BlockSpec((1, Op), lambda i: (0, 0)),    # bias: grid-constant
                ],
                out_specs=pl.BlockSpec((tm, Op), lambda i: (i, 0)),
            ),
            compiler_params=pltpu.CompilerParams(
                dimension_semantics=("parallel",),
                vmem_limit_bytes=_VMEM_LIMIT if ws > 12 * 1024 * 1024 else None),
            cost_estimate=cost,
        )(x, w_co, b_row)
    else:
        # Fallback: tiled reduction over C with a persistent f32 accumulator.
        tn = tn if tn is not None else _pick_tile(Op, 512)
        tk = tk if tk is not None else _pick_tile(Cp, 1024)
        assert Op % tn == 0 and Cp % tk == 0, "tn/tk must divide the padded O/C"
        grid = (Bp // tm, Op // tn, Cp // tk)
        ws = 2 * (tm * tk + tk * tn + tm * tn) * isz + tm * tn * 4 + 2 * tn * 4
        cost = pl.CostEstimate(
            flops=flops, transcendentals=0,
            # Actual HBM traffic with re-streaming across the i / j axes.
            bytes_accessed=((Op // tn) * Bp * Cp + (Bp // tm) * Cp * Op
                            + Bp * Op) * isz + Op * 4)
        out = pl.pallas_call(
            _tiled_kernel,
            out_shape=jax.ShapeDtypeStruct((Bp, Op), dtype),
            grid_spec=pltpu.PrefetchScalarGridSpec(
                num_scalar_prefetch=0,
                grid=grid,
                in_specs=[
                    pl.BlockSpec((tm, tk), lambda i, j, k: (i, k)),   # x tile
                    pl.BlockSpec((tk, tn), lambda i, j, k: (k, j)),   # weight tile (C, O) layout
                    pl.BlockSpec((1, tn), lambda i, j, k: (0, j)),    # bias tile
                ],
                out_specs=pl.BlockSpec((tm, tn), lambda i, j, k: (i, j)),
                scratch_shapes=[pltpu.VMEM((tm, tn), jnp.float32)],
            ),
            compiler_params=pltpu.CompilerParams(
                dimension_semantics=("parallel", "parallel", "arbitrary"),
                vmem_limit_bytes=_VMEM_LIMIT if ws > 12 * 1024 * 1024 else None),
            cost_estimate=cost,
        )(x, w_co, b_row)

    if Bp != B or Op != out_features:
        out = out[:B, :out_features]
    return out


def conv1d_head(x, weight, bias, **kwargs):
    """Convenience wrapper from raw PyTorch-layout params.

    Note: parameter prep runs per call here; in a hot loop call
    prepare_conv1d_head_params once and use conv1d_head_apply.
    """
    w_co, b_row, out_features = prepare_conv1d_head_params(
        weight, bias, compute_dtype=x.dtype)
    return conv1d_head_apply(x, w_co, b_row, out_features, **kwargs)


if __name__ == "__main__":
    # Small deterministic shapes consistent with forward((B, C)) -> (B, O).
    B, C, O = 16, 384, 256
    key = jax.random.PRNGKey(0)
    kx, kw, kb = jax.random.split(key, 3)

    x = jax.random.normal(kx, (B, C), dtype=jnp.float32)

    # Deterministic init mimicking nn.Conv1d default:
    # uniform(-sqrt(k), sqrt(k)) with k = 1 / (in_channels * kernel_size).
    bound = (1.0 / C) ** 0.5
    weight = jax.random.uniform(kw, (O, C, 1), dtype=jnp.float32,
                                minval=-bound, maxval=bound)
    bias = jax.random.uniform(kb, (O,), dtype=jnp.float32,
                              minval=-bound, maxval=bound)

    # One-time parameter prep (hoisted out of the per-call path).
    w_co, b_row, out_features = prepare_conv1d_head_params(
        weight, bias, compute_dtype=jnp.float32)

    # Pure-JAX reference: conv1x1 + avg-pool over length-1 == matmul + bias.
    ref = jnp.dot(x, weight[:, :, 0].T, precision=lax.Precision.HIGHEST) + bias

    # Fast path: single-pass, weight-resident kernel (1-D batch grid, 2 tiles).
    out = conv1d_head_apply(x, w_co, b_row, out_features)
    jax.block_until_ready(out)
    assert out.shape == (B, O)
    assert jnp.allclose(out, ref, atol=2e-3, rtol=2e-3)

    # Tiled fallback path (forced small tiles): exercises the (i, j, k) grid,
    # the k==0 assign / k>0 accumulate, and the bias epilogue.
    out_tiled = conv1d_head_apply(x, w_co, b_row, out_features, tn=128, tk=128)
    jax.block_until_ready(out_tiled)
    assert jnp.allclose(out_tiled, ref, atol=2e-3, rtol=2e-3)

    print("KERNEL_OK")
</pallas_src>

<mosaic_0001>
module attributes {stable_mosaic.version = 11 : i64} {
  func.func @_single_pass_kernel(%arg0: i32, %arg1: memref<8x384xf32, #tpu.memory_space<vmem>>, %arg2: memref<384x256xf32, #tpu.memory_space<vmem>>, %arg3: memref<1x256xf32, #tpu.memory_space<vmem>>, %arg4: memref<8x256xf32, #tpu.memory_space<vmem>>) attributes {dimension_semantics = [#tpu.dimension_semantics<parallel>], iteration_bounds = array<i64: 2>, scalar_prefetch = 0 : i64, scratch_operands = 0 : i64, tpu.core_type = #tpu.core_type<tc>, window_params = [{transform_indices = @transform_0, window_bounds = array<i64: 8, 384>}, {pipeline_mode = #tpu.pipeline_mode<synchronous>, transform_indices = @transform_1, window_bounds = array<i64: 384, 256>}, {pipeline_mode = #tpu.pipeline_mode<synchronous>, transform_indices = @transform_2, window_bounds = array<i64: 1, 256>}, {transform_indices = @transform_3, window_bounds = array<i64: 8, 256>}]} {
    %c0 = arith.constant 0 : index
    %c0_0 = arith.constant 0 : index
    %0 = vector.load %arg1[%c0, %c0_0] : memref<8x384xf32, #tpu.memory_space<vmem>>, vector<8x384xf32>
    %c0_1 = arith.constant 0 : index
    %c0_2 = arith.constant 0 : index
    %1 = vector.load %arg2[%c0_1, %c0_2] : memref<384x256xf32, #tpu.memory_space<vmem>>, vector<384x256xf32>
    %cst = arith.constant dense<0.000000e+00> : vector<8x256xf32>
    %2 = tpu.matmul %0, %1, %cst {dimension_numbers = #tpu.dot_dimension_numbers<[1], [0], [0], [1], [0, 0, 1, 1], [], []>} : vector<8x384xf32>, vector<384x256xf32>, vector<8x256xf32> -> vector<8x256xf32>
    %c0_3 = arith.constant 0 : index
    %c0_4 = arith.constant 0 : index
    %3 = vector.load %arg3[%c0_3, %c0_4] : memref<1x256xf32, #tpu.memory_space<vmem>>, vector<1x256xf32>
    %4 = vector.broadcast %3 : vector<1x256xf32> to vector<8x256xf32>
    %5 = arith.addf %2, %4 : vector<8x256xf32>
    %c0_5 = arith.constant 0 : index
    %c0_6 = arith.constant 0 : index
    %6 = vector.load %arg4[%c0_5, %c0_6] : memref<8x256xf32, #tpu.memory_space<vmem>>, vector<8x256xf32>
    tpu.vector_store %arg4[%c0_5, %c0_6], %5 {strides = array<i32>} : memref<8x256xf32, #tpu.memory_space<vmem>>, vector<8x256xf32>,
    return
  }
  func.func @transform_0(%arg0: i32) -> (i32, i32) {
    %c0_i32 = arith.constant 0 : i32
    %c0_i32_0 = arith.constant 0 : i32
    return %arg0, %c0_i32 : i32, i32
  }
  func.func @transform_1(%arg0: i32) -> (i32, i32) {
    %c0_i32 = arith.constant 0 : i32
    %c0_i32_0 = arith.constant 0 : i32
    %c0_i32_1 = arith.constant 0 : i32
    return %c0_i32, %c0_i32_0 : i32, i32
  }
  func.func @transform_2(%arg0: i32) -> (i32, i32) {
    %c0_i32 = arith.constant 0 : i32
    %c0_i32_0 = arith.constant 0 : i32
    %c0_i32_1 = arith.constant 0 : i32
    return %c0_i32, %c0_i32_0 : i32, i32
  }
  func.func @transform_3(%arg0: i32) -> (i32, i32) {
    %c0_i32 = arith.constant 0 : i32
    %c0_i32_0 = arith.constant 0 : i32
    return %arg0, %c0_i32 : i32, i32
  }
}

</mosaic_0001>

<bundles_post_ra>
// kernel: tpu_custom_call.1
= control target key start
LH: loop header
LB: loop body
LE: loop exit
PB: predicated region body
PF: predicated region fallthrough
CT: control target
= control target key end

     0   :  { %8 = vsyncpa [#allocation3], 0  ;;  %s942_s0 = inlined_call_operand.hbm [shape: f32[16,384], index: 0, kind: input, shape index: {}]   ;;  %s943_s1 = inlined_call_operand.hbm [shape: f32[384,256], index: 1, kind: input, shape index: {}]   ;;  %s944_s2 = inlined_call_operand.vmem [shape: f32[1,256], index: 2, kind: input, shape index: {}]   ;;  %s945_s3 = inlined_call_operand.hbm [shape: f32[16,256], index: 3, kind: output, shape index: {}]  }
   0x1   :  { %10 = vsyncpa [#allocation3 + $0x1], 0 }
   0x2   :  { %11 = vsyncpa [#allocation6], 0 }
   0x3   :  { %12 = vsyncpa [#allocation4], 0 }
   0x4   :  { %14 = vsyncpa [#allocation4 + $0x1], 0  ;;  %s779_s12 = smov 0   ;;  %s781_s13 = smov 0  }
   0x5   :  { %s783_s14 = smov 0   ;;  %s785_s15 = smov 0  }
   0x6 LB: > { %s800_s16 = sadd.s32 4294967295, %s751_s15   ;;  %s552_s17 = sadd.s32 4294967294, %s751_s15   ;;  %s751_s15 = sphi %s785_s15, %s967_s15   ;;  %s747_s14 = sphi %s783_s14, %s966_s14   ;;  %s743_s13 = sphi %s781_s13, %s965_s13   ;;  %s739_s12 = sphi %s779_s12, %s964_s12  }
   0x7   : > { %p40_p0 = scmp.ne.s32.totalorder %s743_s13, %s739_s12  ;;  %p946_p1 = scmp.eq.s32.totalorder %s800_s16, 0 }
   0x8   : > { %p112_p3 = scmp.eq.s32.totalorder %s552_s17, 1  ;;  %p553_p5 = scmp.ge.s32.totalorder %s751_s15, 1 }
   0x9   : > { %p809_p4 = por %p946_p1, %p40_p0  ;;  %p119_p7 = scmp.lt.s32.totalorder %s751_s15, 3 }
   0xa   : > { %p814_p6 = por %p112_p3, %p40_p0  ;;  %s753_s21 = smov [#allocation5]  }
   0xb   : > { %s950_s18 = scalar_select %p809_p4, 1, 0 }
   0xc   : > { %s951_s19 = scalar_select %p814_p6, 1, 0 }
   0xd   : > { %p819_p8 = pnand %p553_p5, %p119_p7  ;;  %s131_s22 = sshll.u32 %s753_s21, 4  ;;  %s132_s22 = int_to_ptr.vmem [resolvable:$true] %s131_s22 }
   0xe   : > { %s833_s24 = sadd.s32 1, %s751_s15   ;;  %s27_s25 = sadd.s32 1, %s747_s14 }
   0xf   : > { %s952_s20 = scalar_select %p819_p8, 1, 0 }
  0x10   : > { %p577_p9 = pneg %p819_p8  ;;  %s24_s26 = ssub.s32 %s751_s15, %s833_s24 }
  0x11   : > { %s640_s27 = scalar_lea.vmem %s132_s22, 12288  ;;  %p648_p5 = scmp.lt.s32.totalorder %s132_s22, %s132_s22 }
  0x12   : > { %p828_p11 = pnand %p577_p9, %p946_p1  ;;  %p641_p13 = scmp.ne.s32.totalorder %s132_s22, %s640_s27 }
  0x13   : > { %p649_p7 = scmp.lt.s32.totalorder %s640_s27, %s640_s27 }
  0x14   : > { %p631_p12 = pneg %p828_p11 }
  0x15   : > { %p650_p10 = por %p649_p7, %p648_p5 }
  0x16   : > { %p643_p0 = pnand %p641_p13, %p631_p12 }
  0x18   : > { %p644_p3 = pneg %p643_p0 }
  0x1a   : > { %p651_p2 = pnand %p650_p10, %p644_p3 }
  0x1c   : > { %654 = shalt.err (!%p651_p2)
}
  0x1d   : > { %s754_s28 = smov 256   ;;  %s755_s29 = smov 16  }
  0x1e   : > { %580 = dma.hbm_to_vmem [thread:$0]  (!%p828_p11), %s943_s1, 12288, %s132_s22, [#allocation6], %s754_s28, %s754_s28, %s755_s29  }
  0x1f   : > { %p25_p9 = scmp.eq.s32.totalorder %s24_s26, 0  ;;  %p34_p12 = scmp.ne.s32.totalorder %s747_s14, %s743_s13 }
  0x20   : > { %p35_p10 = scmp.eq.s32.totalorder %s751_s15, 0  ;;  %p590_p2 = scmp.lt.s32.totalorder %s751_s15, 2 }
  0x21   : > { %s850_s5 = scalar_select %p25_p9, %s747_s14, %s27_s25  }
  0x22   : > { %p36_p13 = por %p35_p10, %p34_p12  ;;  %p954_p0 = scmp.eq.s32.totalorder %s800_s16, 1 }
  0x23   : > { %s148_s7 = sand.u32 1, %s747_s14   ;;  %s567_s8 = smul.u32 384, %s751_s15 }
  0x24   : > { %p854_p3 = por %p954_p0, %p34_p12  ;;  %s566_s9 = smul.u32 24, %s148_s7 }
  0x25   : > { %p860_p5 = pnand %p590_p2, %p36_p13  ;;  %s867_s21 = scalar_lea.hbm %s942_s0, %s567_s8 }
  0x26   : > { %s955_s6 = scalar_select %p854_p3, 1, 0 }
  0x27   : > { %s152_s22 = scalar_lea.vmem [#allocation2], %s566_s9  ;;  %s149_s25 = scalar_lea.sflag [#allocation3], %s148_s7 }
  0x28   : > { %s160_s23 = sshll.u32 %s152_s22, 4  ;;  %s655_s26 = scalar_lea.hbm %s867_s21, 384  ;;  %s161_s23 = int_to_ptr.vmem [resolvable:$true] %s160_s23 }
  0x29   : > { %p656_p11 = scmp.ne.s32.totalorder %s867_s21, %s655_s26  ;;  %p657_p7 = pneg %p860_p5 }
  0x2a   : > { %s660_s29 = scalar_lea.hbm %s942_s0, 768  ;;  %p661_p10 = scmp.lt.s32.totalorder %s867_s21, %s942_s0 }
  0x2b   : > { %p658_p9 = pnand %p657_p7, %p656_p11  ;;  %p662_p2 = scmp.lt.s32.totalorder %s660_s29, %s655_s26 }
  0x2d   : > { %p659_p12 = pneg %p658_p9  ;;  %p663_p13 = por %p662_p2, %p661_p10 }
  0x2f   : > { %p664_p0 = pnand %p663_p13, %p659_p12 }
  0x31   : > { %667 = shalt.err (!%p664_p0)
}
  0x32   : > { %s668_s8 = scalar_lea.vmem %s161_s23, 384  ;;  %s756_s7 = smov [#allocation2]  }
  0x33   : > { %p669_p1 = scmp.ne.s32.totalorder %s161_s23, %s668_s8  ;;  %s673_s9 = sshll.u32 %s756_s7, 4  ;;  %s674_s9 = int_to_ptr.vmem [resolvable:$false] %s673_s9 }
  0x34   : > { %s675_s11 = scalar_lea.vmem %s674_s9, 768  ;;  %p676_p11 = scmp.lt.s32.totalorder %s161_s23, %s674_s9 }
  0x35   : > { %p671_p6 = pnand %p669_p1, %p657_p7  ;;  %p677_p9 = scmp.lt.s32.totalorder %s675_s11, %s668_s8 }
  0x37   : > { %p672_p3 = pneg %p671_p6  ;;  %p678_p4 = por %p677_p9, %p676_p11 }
  0x39   : > { %p679_p8 = pnand %p678_p4, %p672_p3 }
  0x3b   : > { %682 = shalt.err (!%p679_p8)
}
  0x3c   : > { %584 = dma.hbm_to_vmem [thread:$0]  (!%p860_p5), %s867_s21, 384, %s161_s23, %s149_s25  }
  0x3d   : > { %p957_p12 = scmp.ne.s32.totalorder %s952_s20, 0 }
  0x3e   : > { %s886_s17 = sand.u32 (!%p957_p12), 1, %s743_s13   ;;  %p958_p1 = scmp.ne.s32.totalorder (!%p957_p12), %s950_s18, 0 }
  0x3f   : > { %169 = sbr.rel (%p957_p12) target bundleno = 349 (0x15d), region = 32  ;;  %s172_s26 = scalar_lea.sflag (!%p957_p12), [#allocation3], %s886_s17 }
  0x40   : > { %s568_s22 = smul.u32 (!%p957_p12), 24, %s886_s17 }
  0x42   : > { %s890_s27 = scalar_lea.vmem (!%p957_p12), [#allocation2], %s568_s22 }
  0x44   : > { %726 = dma.done.wait (%p958_p1), %s172_s26, 384  }
  0x45   : > { %728 = vsyncadd (%p958_p1), %s172_s26, 4294966912  ;;  %p959_p4 = scmp.eq.s32.totalorder %s800_s16, 0 }
  0x47   : > { %730 = dma.done.wait (%p959_p4), [#allocation6], 12288   ;;  %p960_p6 = pmov %p959_p4 }
  0x48   : > { %v757_v0 = vmov 0.0   ;;  %v236_v1 = vld [vmem:[#allocation5 + $0xf8] sm:$0xff]  ;;  %v235_v2 = vld [vmem:[#allocation5 + $0xf0] sm:$0xff]  ;;  %v234_v3 = vld [vmem:[#allocation5 + $0xe8] sm:$0xff]  ;;  %s559_s10 = sshll.u32 %s886_s17, 4  ;;  %s565_s21 = sshll.u32 %s800_s16, 8 }
  0x49   : > { %732 = vsyncadd (%p960_p6), [#allocation6], 4294955008  ;;  %448 = vmatprep.mubr.f32.mxu1 %v757_v0  ;;  %313 = vmatprep.subr.mxu0 %v236_v1  ;;  %v233_v4 = vld [vmem:[#allocation5 + $0xe0] sm:$0xff]  ;;  %v232_v5 = vld [vmem:[#allocation5 + $0xd8] sm:$0xff]  ;;  %s201_s23 = scalar_lea.vmem [#allocation7], %s559_s10  ;;  %s470_s30 = scalar_lea.hbm %s945_s3, %s565_s21 }
  0x4a   : > { %314 = vmatpush1.msra.mxu0 %v235_v2  ;;  %v231_v6 = vld [vmem:[#allocation5 + $0xd0] sm:$0xff]  ;;  %v230_v7 = vld [vmem:[#allocation5 + $0xc8] sm:$0xff]  ;;  %v229_v8 = vld [vmem:[#allocation5 + $0xc0] sm:$0xff]  ;;  %s472_s25 = sshll.u32 %s201_s23, 4  ;;  %s458_s4 = scalar_lea.sflag [#allocation4], %s886_s17  ;;  %s473_s25 = int_to_ptr.vmem [resolvable:$true] %s472_s25 }
  0x4b   : > { %315 = vmatprep.subr.mxu0 %v234_v3  ;;  %v228_v9 = vld [vmem:[#allocation5 + $0xb8] sm:$0xff]  ;;  %v227_v10 = vld [vmem:[#allocation5 + $0xb0] sm:$0xff]  ;;  %v226_v11 = vld [vmem:[#allocation5 + $0xa8] sm:$0xff]  ;;  %s683_s8 = scalar_lea.vmem %s473_s25, 256  ;;  %p961_p3 = scmp.ne.s32.totalorder %s955_s6, 0 }
  0x4c   : > { %316 = vmatpush1.msra.mxu0 %v233_v4  ;;  %v225_v12 = vld [vmem:[#allocation5 + $0xa0] sm:$0xff]  ;;  %v224_v13 = vld [vmem:[#allocation5 + $0x98] sm:$0xff]  ;;  %v223_v14 = vld [vmem:[#allocation5 + $0x90] sm:$0xff]  ;;  %p684_p8 = scmp.ne.s32.totalorder %s473_s25, %s683_s8  ;;  %s758_s16 = smov [#allocation7]  }
  0x4d   : > { %317 = vmatprep.subr.mxu0 %v232_v5  ;;  %v300_v15 = vld [vmem:[#allocation5 + $0x2f8] sm:$0xff]  ;;  %v299_v16 = vld [vmem:[#allocation5 + $0x2f0] sm:$0xff]  ;;  %v222_v17 = vld [vmem:[#allocation5 + $0x88] sm:$0xff]  ;;  %s687_s7 = sshll.u32 %s758_s16, 4  ;;  %s688_s7 = int_to_ptr.vmem [resolvable:$false] %s687_s7 }
  0x4e   : > { %318 = vmatpush1.msra.mxu0 %v231_v6  ;;  %384 = vmatprep.subr.mxu1 %v300_v15  ;;  %v298_v18 = vld [vmem:[#allocation5 + $0x2e8] sm:$0xff]  ;;  %v221_v19 = vld [vmem:[#allocation5 + $0x80] sm:$0xff]  ;;  %v296_v21 = vld [vmem:[#allocation5 + $0x2d8] sm:$0xff]  ;;  %p685_p5 = pnand %p684_p8, %p961_p3  ;;  %s689_s9 = scalar_lea.vmem %s688_s7, 512 }
  0x4f   : > { %319 = vmatprep.subr.mxu0 %v230_v7  ;;  %385 = vmatpush1.msra.mxu1 %v299_v16  ;;  %v297_v20 = vld [vmem:[#allocation5 + $0x2e0] sm:$0xff]  ;;  %v220_v22 = vld [vmem:[#allocation5 + $0x78] sm:$0xff]  ;;  %v295_v23 = vld [vmem:[#allocation5 + $0x2d0] sm:$0xff]  ;;  %p690_p10 = scmp.lt.s32.totalorder %s473_s25, %s688_s7  ;;  %p691_p2 = scmp.lt.s32.totalorder %s689_s9, %s683_s8 }
  0x50   : > { %320 = vmatpush1.msra.mxu0 %v229_v8  ;;  %386 = vmatprep.subr.mxu1 %v298_v18  ;;  %v219_v24 = vld [vmem:[#allocation5 + $0x70] sm:$0xff]  ;;  %v294_v25 = vld [vmem:[#allocation5 + $0x2c8] sm:$0xff]  ;;  %v293_v27 = vld [vmem:[#allocation5 + $0x2c0] sm:$0xff]  ;;  %p686_p7 = pneg %p685_p5 }
  0x51   : > { %321 = vmatprep.subr.mxu0 %v228_v9  ;;  %387 = vmatpush1.msra.mxu1 %v297_v20  ;;  %v218_v26 = vld [vmem:[#allocation5 + $0x68] sm:$0xff]  ;;  %v217_v28 = vld [vmem:[#allocation5 + $0x60] sm:$0xff]  ;;  %v292_v29 = vld [vmem:[#allocation5 + $0x2b8] sm:$0xff]  ;;  %p692_p13 = por %p691_p2, %p690_p10 }
  0x52   : > { %322 = vmatpush1.msra.mxu0 %v227_v10  ;;  %388 = vmatprep.subr.mxu1 %v296_v21  ;;  %v216_v30 = vld [vmem:[#allocation5 + $0x58] sm:$0xff]  ;;  %v291_v31 = vld [vmem:[#allocation5 + $0x2b0] sm:$0xff]  ;;  %v290_v33 = vld [vmem:[#allocation5 + $0x2a8] sm:$0xff] }
  0x53   : > { %323 = vmatprep.subr.mxu0 %v226_v11  ;;  %389 = vmatpush1.msra.mxu1 %v295_v23  ;;  %v215_v32 = vld [vmem:[#allocation5 + $0x50] sm:$0xff]  ;;  %v214_v34 = vld [vmem:[#allocation5 + $0x48] sm:$0xff]  ;;  %v289_v35 = vld [vmem:[#allocation5 + $0x2a0] sm:$0xff]  ;;  %p693_p0 = pnand %p692_p13, %p686_p7 }
  0x54   : > { %324 = vmatpush1.msra.mxu0 %v225_v12  ;;  %390 = vmatprep.subr.mxu1 %v294_v25  ;;  %v213_v36 = vld [vmem:[#allocation5 + $0x40] sm:$0xff]  ;;  %v288_v37 = vld [vmem:[#allocation5 + $0x298] sm:$0xff]  ;;  %v287_v39 = vld [vmem:[#allocation5 + $0x290] sm:$0xff] }
  0x55   : > { %325 = vmatprep.subr.mxu0 %v224_v13  ;;  %391 = vmatpush1.msra.mxu1 %v293_v27  ;;  %v212_v38 = vld [vmem:[#allocation5 + $0x38] sm:$0xff]  ;;  %v211_v40 = vld [vmem:[#allocation5 + $0x30] sm:$0xff]  ;;  %v286_v41 = vld [vmem:[#allocation5 + $0x288] sm:$0xff] }
  0x56   : > { %326 = vmatpush1.msra.mxu0 %v223_v14  ;;  %392 = vmatprep.subr.mxu1 %v292_v29  ;;  %v210_v42 = vld [vmem:[#allocation5 + $0x28] sm:$0xff]  ;;  %v285_v43 = vld [vmem:[#allocation5 + $0x280] sm:$0xff]  ;;  %v284_v45 = vld [vmem:[#allocation5 + $0x278] sm:$0xff] }
  0x57   : > { %327 = vmatprep.subr.mxu0 %v222_v17  ;;  %393 = vmatpush1.msra.mxu1 %v291_v31  ;;  %v209_v44 = vld [vmem:[#allocation5 + $0x20] sm:$0xff]  ;;  %v208_v46 = vld [vmem:[#allocation5 + $0x18] sm:$0xff]  ;;  %v283_v47 = vld [vmem:[#allocation5 + $0x270] sm:$0xff] }
  0x58   : > { %328 = vmatpush1.msra.mxu0 %v221_v19  ;;  %394 = vmatprep.subr.mxu1 %v290_v33  ;;  %v207_v48 = vld [vmem:[#allocation5 + $0x10] sm:$0xff]  ;;  %v282_v49 = vld [vmem:[#allocation5 + $0x268] sm:$0xff]  ;;  %v281_v51 = vld [vmem:[#allocation5 + $0x260] sm:$0xff] }
  0x59   : > { %329 = vmatprep.subr.mxu0 %v220_v22  ;;  %395 = vmatpush1.msra.mxu1 %v289_v35  ;;  %v206_v50 = vld [vmem:[#allocation5 + $0x8] sm:$0xff]  ;;  %v205_v52 = vld [vmem:[#allocation5] sm:$0xff]  ;;  %v280_v53 = vld [vmem:[#allocation5 + $0x258] sm:$0xff] }
  0x5a   : > { %330 = vmatpush1.msra.mxu0 %v219_v24  ;;  %396 = vmatprep.subr.mxu1 %v288_v37  ;;  %v268_v54 = vld [vmem:[#allocation5 + $0x1f8] sm:$0xff]  ;;  %v279_v55 = vld [vmem:[#allocation5 + $0x250] sm:$0xff]  ;;  %v278_v57 = vld [vmem:[#allocation5 + $0x248] sm:$0xff] }
  0x5b   : > { %331 = vmatprep.subr.mxu0 %v218_v26  ;;  %397 = vmatpush1.msra.mxu1 %v287_v39  ;;  %v267_v56 = vld [vmem:[#allocation5 + $0x1f0] sm:$0xff]  ;;  %v266_v58 = vld [vmem:[#allocation5 + $0x1e8] sm:$0xff]  ;;  %v277_v59 = vld [vmem:[#allocation5 + $0x240] sm:$0xff] }
  0x5c   : > { %332 = vmatpush1.msra.mxu0 %v217_v28  ;;  %398 = vmatprep.subr.mxu1 %v286_v41  ;;  %v265_v60 = vld [vmem:[#allocation5 + $0x1e0] sm:$0xff]  ;;  %v276_v61 = vld [vmem:[#allocation5 + $0x238] sm:$0xff]  ;;  %v275_v63 = vld [vmem:[#allocation5 + $0x230] sm:$0xff] }
  0x5d   : > { %333 = vmatprep.subr.mxu0 %v216_v30  ;;  %399 = vmatpush1.msra.mxu1 %v285_v43  ;;  %v264_v62 = vld [vmem:[#allocation5 + $0x1d8] sm:$0xff]  ;;  %v263_v0 = vld [vmem:[#allocation5 + $0x1d0] sm:$0xff]  ;;  %v274_v1 = vld [vmem:[#allocation5 + $0x228] sm:$0xff] }
  0x5e   : > { %334 = vmatpush1.msra.mxu0 %v215_v32  ;;  %400 = vmatprep.subr.mxu1 %v284_v45  ;;  %v262_v2 = vld [vmem:[#allocation5 + $0x1c8] sm:$0xff]  ;;  %v273_v3 = vld [vmem:[#allocation5 + $0x220] sm:$0xff]  ;;  %v272_v5 = vld [vmem:[#allocation5 + $0x218] sm:$0xff] }
  0x5f   : > { %335 = vmatprep.subr.mxu0 %v214_v34  ;;  %401 = vmatpush1.msra.mxu1 %v283_v47  ;;  %v261_v4 = vld [vmem:[#allocation5 + $0x1c0] sm:$0xff]  ;;  %v260_v6 = vld [vmem:[#allocation5 + $0x1b8] sm:$0xff]  ;;  %v271_v7 = vld [vmem:[#allocation5 + $0x210] sm:$0xff] }
  0x60   : > { %336 = vmatpush1.msra.mxu0 %v213_v36  ;;  %402 = vmatprep.subr.mxu1 %v282_v49  ;;  %v259_v8 = vld [vmem:[#allocation5 + $0x1b0] sm:$0xff]  ;;  %v270_v9 = vld [vmem:[#allocation5 + $0x208] sm:$0xff]  ;;  %v257_v12 = vld [vmem:[#allocation5 + $0x1a0] sm:$0xff]  ;;  %v303_v36 = vlaneseq }
  0x61   : > { %337 = vmatprep.subr.mxu0 %v212_v38  ;;  %403 = vmatpush1.msra.mxu1 %v281_v51  ;;  %v258_v10 = vld [vmem:[#allocation5 + $0x1a8] sm:$0xff]  ;;  %v203_v11 = vld [vmem:[%s890_s27 + $0x8] sm:$0xff]  ;;  %v269_v13 = vld [vmem:[#allocation5 + $0x200] sm:$0xff] }
  0x62   : > { %338 = vmatpush1.msra.mxu0 %v211_v40  ;;  %404 = vmatprep.subr.mxu1 %v280_v53  ;;  %v256_v14 = vld [vmem:[#allocation5 + $0x198] sm:$0xff]  ;;  %v255_v16 = vld [vmem:[#allocation5 + $0x190] sm:$0xff]  ;;  %v254_v17 = vld [vmem:[#allocation5 + $0x188] sm:$0xff]  ;;  %v304_v37 = vshrl.u32 %v303_v36, 7 }
  0x63   : > { %339 = vmatprep.subr.mxu0 %v210_v42  ;;  %405 = vmatpush1.msra.mxu1 %v279_v55  ;;  %v204_v15 = vld [vmem:[%s890_s27 + $0x10] sm:$0xff]  ;;  %v251_v20 = vld [vmem:[#allocation5 + $0x170] sm:$0xff]  ;;  %v250_v21 = vld [vmem:[#allocation5 + $0x168] sm:$0xff] }
  0x64   : > { %340 = vmatpush1.msra.mxu0 %v209_v44  ;;  %406 = vmatprep.subr.mxu1 %v278_v57  ;;  %v253_v18 = vld [vmem:[#allocation5 + $0x180] sm:$0xff]  ;;  %v252_v19 = vld [vmem:[#allocation5 + $0x178] sm:$0xff]  ;;  %v247_v24 = vld [vmem:[#allocation5 + $0x150] sm:$0xff]  ;;  %v305_v38 = vsub.s32 0, %v304_v37  ;;  %v309_v40 = vsub.s32 1, %v304_v37 }
  0x65   : > { %341 = vmatprep.subr.mxu0 %v208_v46  ;;  %407 = vmatpush1.msra.mxu1 %v277_v59  ;;  %v249_v22 = vld [vmem:[#allocation5 + $0x160] sm:$0xff]  ;;  %v248_v23 = vld [vmem:[#allocation5 + $0x158] sm:$0xff]  ;;  %v246_v25 = vld [vmem:[#allocation5 + $0x148] sm:$0xff] }
  0x66   : > { %342 = vmatpush1.msra.mxu0 %v207_v48  ;;  %408 = vmatprep.subr.mxu1 %v276_v61  ;;  %v245_v26 = vld [vmem:[#allocation5 + $0x140] sm:$0xff]  ;;  %v244_v27 = vld [vmem:[#allocation5 + $0x138] sm:$0xff]  ;;  %v243_v28 = vld [vmem:[#allocation5 + $0x130] sm:$0xff] }
  0x67   : > { %343 = vmatprep.subr.mxu0 %v206_v50  ;;  %409 = vmatpush1.msra.mxu1 %v275_v63  ;;  %v242_v29 = vld [vmem:[#allocation5 + $0x128] sm:$0xff]  ;;  %v241_v30 = vld [vmem:[#allocation5 + $0x120] sm:$0xff]  ;;  %v240_v31 = vld [vmem:[#allocation5 + $0x118] sm:$0xff] }
  0x68   : > { %344 = vmatpush1.msra.mxu0 %v205_v52  ;;  %410 = vmatprep.subr.mxu1 %v274_v1  ;;  %v239_v32 = vld [vmem:[#allocation5 + $0x110] sm:$0xff]  ;;  %v238_v33 = vld [vmem:[#allocation5 + $0x108] sm:$0xff]  ;;  %v237_v34 = vld [vmem:[#allocation5 + $0x100] sm:$0xff] }
  0x69   : > { %345 = vmatprep.subr.mxu0 %v268_v54  ;;  %411 = vmatpush1.msra.mxu1 %v273_v3  ;;  %v202_v35 = vld [vmem:[%s890_s27] sm:$0xff] }
  0x6a   : > { %346 = vmatpush2.msra.mxu0 %v267_v56  ;;  %412 = vmatprep.subr.mxu1 %v272_v5  ;;  %v301_v39 = vld [vmem:[%s944_s2] sm:$0x3] }
  0x6b   : > { %347 = vmatprep.subr.mxu0 %v266_v58  ;;  %413 = vmatpush1.msra.mxu1 %v271_v7  ;;  %v306_v41 = vrot.slane %v301_v39, %v305_v38  ;;  %v310_v42 = vrot.slane %v301_v39, %v309_v40 }
  0x6c   : > { %348 = vmatpush2.msra.mxu0 %v265_v60  ;;  %414 = vmatprep.subr.mxu1 %v270_v9 }
  0x6d   : > { %349 = vmatprep.subr.mxu0 %v264_v62  ;;  %377 = vmatprep.mubr.f32.mxu0 %v203_v11 }
  0x6e   : > { %350 = vmatpush2.msra.mxu0 %v263_v0  ;;  %415 = vmatpush1.msra.mxu1 %v269_v13 }
  0x6f   : > { %351 = vmatprep.subr.mxu0 %v262_v2  ;;  %449 = vmatmul.mubr.f32.vlgmr.msra.gmra.mxu1 %v204_v15 }
  0x70   : > { %352 = vmatpush2.msra.mxu0 %v261_v4 }
  0x71   : > { %353 = vmatprep.subr.mxu0 %v260_v6 }
  0x72   : > { %354 = vmatpush2.msra.mxu0 %v259_v8 }
  0x73   : > { %355 = vmatprep.subr.mxu0 %v258_v10 }
  0x74   : > { %356 = vmatpush2.msra.mxu0 %v257_v12 }
  0x75   : > { %357 = vmatprep.subr.mxu0 %v256_v14 }
  0x76   : > { %358 = vmatpush2.msra.mxu0 %v255_v16 }
  0x77   : > { %359 = vmatprep.subr.mxu0 %v254_v17 }
  0x78   : > { %360 = vmatpush2.msra.mxu0 %v253_v18 }
  0x79   : > { %361 = vmatprep.subr.mxu0 %v252_v19 }
  0x7a   : > { %362 = vmatpush2.msra.mxu0 %v251_v20 }
  0x7b   : > { %363 = vmatprep.subr.mxu0 %v250_v21 }
  0x7c   : > { %364 = vmatpush2.msra.mxu0 %v249_v22 }
  0x7d   : > { %365 = vmatprep.subr.mxu0 %v248_v23 }
  0x7e   : > { %366 = vmatpush2.msra.mxu0 %v247_v24 }
  0x7f   : > { %367 = vmatprep.subr.mxu0 %v246_v25 }
  0x80   : > { %368 = vmatpush2.msra.mxu0 %v245_v26 }
  0x81   : > { %369 = vmatprep.subr.mxu0 %v244_v27 }
  0x82   : > { %370 = vmatpush2.msra.mxu0 %v243_v28 }
  0x83   : > { %371 = vmatprep.subr.mxu0 %v242_v29 }
  0x84   : > { %372 = vmatpush2.msra.mxu0 %v241_v30 }
  0x85   : > { %373 = vmatprep.subr.mxu0 %v240_v31 }
  0x86   : > { %374 = vmatpush2.msra.mxu0 %v239_v32 }
  0x87   : > { %375 = vmatprep.subr.mxu0 %v238_v33 }
  0x88   : > { %376 = vmatpush2.msra.mxu0 %v237_v34 }
  0x89   : > { %378 = vmatmul.mubr.f32.vlgmr.msra.gmra.mxu0 %v202_v35 }
 0x12f   : > { %v450_v44 = vpop.f32.mrf.mxu1 }
 0x131   : > { %v452_v49 = vpop.f32.mrf.mxu1 }
 0x149   : > { %v379_v43 = vpop.f32.mrf.mxu0 }
 0x14a   : > { %v380_v45 = vadd.f32 %v379_v43, %v306_v41 }
 0x14b   : > { %v381_v46 = vpop.f32.mrf.mxu0 }
 0x14c   : > { %v451_v47 = vadd.f32 %v450_v44, %v380_v45  ;;  %v382_v48 = vadd.f32 %v381_v46, %v310_v42 }
 0x14e   : > { %455 = vst [vmem:[%s201_s23] sm:$0xff] %v451_v47  ;;  %v453_v50 = vadd.f32 %v452_v49, %v382_v48 }
 0x150   : > { %456 = vst [vmem:[%s201_s23 + $0x8] sm:$0xff] %v453_v50 }
 0x151   : > { %696 = shalt.err (!%p693_p0)
}
 0x152   : > { %s697_s11 = scalar_lea.hbm %s470_s30, 256  ;;  %s701_s26 = scalar_lea.hbm %s945_s3, 512 }
 0x153   : > { %p698_p11 = scmp.ne.s32.totalorder %s470_s30, %s697_s11  ;;  %p702_p1 = scmp.lt.s32.totalorder %s470_s30, %s945_s3 }
 0x154   : > { %p703_p4 = scmp.lt.s32.totalorder %s701_s26, %s697_s11 }
 0x155   : > { %p699_p9 = pnand %p698_p11, %p961_p3 }
 0x156   : > { %p704_p6 = por %p703_p4, %p702_p1 }
 0x157   : > { %p700_p12 = pneg %p699_p9 }
 0x159   : > { %p705_p8 = pnand %p704_p6, %p700_p12 }
 0x15b   : > { %708 = shalt.err (!%p705_p8)
}
 0x15c   : > { %575 = dma.vmem_to_hbm [thread:$0]  (%p961_p3), %s473_s25, 256, %s470_s30, %s458_s4  }
 0x15d PF: > { %s484_s20 = sand.u32 1, %s739_s12   ;;  %p962_p5 = scmp.ne.s32.totalorder %s951_s19, 0 }
 0x15e   : > { %p963_p7 = scmp.ge.s32.totalorder %s751_s15, 2  ;;  %s485_s10 = scalar_lea.sflag [#allocation4], %s484_s20 }
 0x160   : > { %p586_p10 = pnand %p963_p7, %p962_p5 }
 0x162   : > { %p587_p2 = pneg %p586_p10 }
 0x164   : > { %734 = dma.done.wait (%p587_p2), %s485_s10, 256  }
 0x165   : > { %736 = vsyncadd (%p587_p2), %s485_s10, 4294967040  ;;  %p17_p13 = scmp.ge.s32.totalorder %s833_s24, 4   ;;  %s964_s12 = smov %s743_s13 }
 0x166   : > { %s965_s13 = smov %s747_s14  ;;  %s966_s14 = smov %s850_s5 }
 0x167   : > { %s967_s15 = smov %s833_s24  ;;  %19 = sbr.rel (!%p17_p13) target bundleno = 6 (0x6), region = 81 }
 0x16c   :  { %490 = vsyncpa [#allocation3], 1 }
 0x16d   :  { %492 = vsyncpa [#allocation3 + $0x1], 1 }
 0x16e   :  { %493 = vsyncpa [#allocation6], 1 }
 0x16f   :  { %494 = vsyncpa [#allocation4], 1 }
 0x170   :  { %496 = vsyncpa [#allocation4 + $0x1], 1 }

</bundles_post_ra>
